<compile_context>
chip_gen: v7x
topology: tpu7x:2x2x1
jax: 0.10.0
libtpu: 0.0.40
codegen_flags: <defaults>
</compile_context>

<pallas_src>
import functools

import jax
import jax.numpy as jnp
import numpy as np
from jax.experimental import pallas as pl
from jax.experimental.pallas import tpu as pltpu


def _round_up(x: int, m: int) -> int:
    return ((x + m - 1) // m) * m


def _dft2d_matrix(h: int, w: int, kp: int, npad: int) -> np.ndarray:
    """Fused 2-D DFT operator for row-major flattened (h, w) images.

    Returns a (kp, 2*npad) matrix M with
        M[r*w + c, u*w + v]        = cos(2*pi*(r*u/h + c*v/w))   (real part)
        M[r*w + c, npad + u*w + v] = sin(2*pi*(r*u/h + c*v/w))   (conjugate imag)
    so X_flat @ M yields [Re(FFT2(X)) | -Im(FFT2(X))]; the sign flip is
    irrelevant because only the magnitude is used.  Rows/columns beyond h*w
    are zero padding (they contribute exactly 0 to the loss).
    """
    hh = np.arange(h)
    ww = np.arange(w)
    ang_h = 2.0 * np.pi * np.outer(hh, hh) / h                      # (h, h): r,u
    ang_w = 2.0 * np.pi * np.outer(ww, ww) / w                      # (w, w): c,v
    ang = ang_h[:, None, :, None] + ang_w[None, :, None, :]         # (h,w,h,w): r,c,u,v
    hw = h * w
    re = np.cos(ang).reshape(hw, hw)
    im = np.sin(ang).reshape(hw, hw)
    m = np.zeros((kp, 2 * npad), np.float32)
    m[:hw, :hw] = re
    m[:hw, npad:npad + hw] = im
    return m


def _fourier_loss_kernel(dft_ref, pred_ref, tgt_ref, out_ref, acc_ref, *,
                         g_step, npad, inv_count):
    step = pl.program_id(0)

    @pl.when(step == 0)
    def _():
        acc_ref[...] = jnp.zeros_like(acc_ref)
        out_ref[0, 0] = jnp.float32(0.0)

    # Stack pred/target along the sublane (M) axis and cast to bf16 in VMEM so
    # the whole 2-D DFT of this step is a single MXU launch with K = h*w.
    x = jnp.concatenate([pred_ref[...], tgt_ref[...]], axis=0)       # (2G, K) f32
    y = jnp.dot(x.astype(jnp.bfloat16), dft_ref[...],
                preferred_element_type=jnp.float32)                  # (2G, 2*npad) f32

    re = y[:, :npad]
    im = y[:, npad:]
    mag2 = re * re + im * im                                         # (2G, npad)
    p2 = mag2[:g_step]
    t2 = mag2[g_step:]
    # (|P| - |T|)^2 = P2 + T2 - 2*sqrt(P2*T2): one EUP sqrt per pixel.
    d2 = p2 + t2 - 2.0 * jnp.sqrt(p2 * t2)                           # (G, npad)

    # Fold into the lane-dense (8, 128) accumulator with pure VPU adds
    # (lane folds are 128-aligned vreg adds; row folds add sublane groups).
    lanes = d2[:, 0:128]
    for c in range(1, npad // 128):
        lanes = lanes + d2[:, c * 128:(c + 1) * 128]                 # (G, 128)
    acc_ref[...] += jnp.sum(lanes.reshape(g_step // 8, 8, 128), axis=0)

    @pl.when(step == pl.num_programs(0) - 1)
    def _():
        out_ref[0, 0] = jnp.sum(acc_ref[...]) * jnp.float32(inv_count)


def fourier_spectrum_loss(pred: jax.Array, target: jax.Array) -> jax.Array:
    """mean((|FFT2(pred)| - |FFT2(target)|)**2) over NCHW inputs."""
    assert pred.shape == target.shape and pred.ndim == 4
    n, c, h, w = pred.shape
    g = n * c
    hw = h * w
    kp = _round_up(hw, 128)    # padded pixel axis (matmul K / input lane dim)
    npad = kp                  # padded per-half frequency axis (output lanes)

    # Images per grid step: multiple of 8 sublanes, capped so per-step VMEM
    # (double-buffered f32 inputs + f32 intermediates + the bf16 DFT constant)
    # stays a few MiB — safe on all of v5e / v6e / v7x without overrides.
    g_step = min(_round_up(g, 8), 1024)
    num_tiles = -(-g // g_step)
    g_pad = num_tiles * g_step

    def flatten(x):
        x = x.reshape(g, hw).astype(jnp.float32)   # free reshape, no transpose
        if g_pad != g or kp != hw:
            # Zero rows / zero pixel-columns contribute exactly 0 to the loss.
            x = jnp.pad(x, ((0, g_pad - g), (0, kp - hw)))
        return x

    pred_f = flatten(pred)
    tgt_f = flatten(target)
    dft = jnp.asarray(_dft2d_matrix(h, w, kp, npad), jnp.bfloat16)   # (kp, 2*npad)

    kernel = functools.partial(_fourier_loss_kernel, g_step=g_step, npad=npad,
                               inv_count=1.0 / float(g * hw))

    flops = int(2 * (2 * g_pad) * kp * (2 * npad))       # 2*M*K*N MAC flops
    transcendentals = int(g_pad * npad)                  # one sqrt per pixel
    bytes_accessed = int(2 * g_pad * kp * 4 + kp * 2 * npad * 2 + 4)

    out = pl.pallas_call(
        kernel,
        out_shape=jax.ShapeDtypeStruct((1, 1), jnp.float32),
        grid_spec=pltpu.PrefetchScalarGridSpec(
            num_scalar_prefetch=0,
            grid=(num_tiles,),
            in_specs=[
                pl.BlockSpec((kp, 2 * npad), lambda i: (0, 0)),   # DFT, fetched once
                pl.BlockSpec((g_step, kp), lambda i: (i, 0)),
                pl.BlockSpec((g_step, kp), lambda i: (i, 0)),
            ],
            out_specs=pl.BlockSpec(memory_space=pltpu.MemorySpace.SMEM),
            scratch_shapes=[pltpu.VMEM((8, 128), jnp.float32)],
        ),
        # Single running accumulator -> the grid axis is a reduction.
        # TODO(synk): on v7x (2 TCs) a leading length-2 "parallel" grid axis
        # with per-core partial outputs would recover dual-core scaling.
        compiler_params=pltpu.CompilerParams(
            dimension_semantics=("arbitrary",)),
        cost_estimate=pl.CostEstimate(
            flops=flops,
            transcendentals=transcendentals,
            bytes_accessed=bytes_accessed),
    )(dft, pred_f, tgt_f)

    return out[0, 0]


if __name__ == "__main__":
    key = jax.random.PRNGKey(0)
    k1, k2 = jax.random.split(key)
    # Small NCHW shapes consistent with the module's forward.
    pred = jax.random.normal(k1, (2, 4, 16, 16), dtype=jnp.float32)
    target = jax.random.normal(k2, (2, 4, 16, 16), dtype=jnp.float32)

    loss = jax.block_until_ready(fourier_spectrum_loss(pred, target))

    # Reference check (plain JAX FFT).  bf16 MXU operands introduce ~1e-3
    # relative error at 16x16, so use a comfortable margin.
    ref = jnp.mean(
        (jnp.abs(jnp.fft.fft2(pred)) - jnp.abs(jnp.fft.fft2(target))) ** 2)
    assert jnp.allclose(loss, ref, rtol=2e-2, atol=1e-2), (loss, ref)

    print("KERNEL_OK")
</pallas_src>

<mosaic_0001>
module attributes {stable_mosaic.version = 11 : i64} {
  func.func @_fourier_loss_kernel(%arg0: i32, %arg1: memref<256x512xbf16, #tpu.memory_space<vmem>>, %arg2: memref<8x256xf32, #tpu.memory_space<vmem>>, %arg3: memref<8x256xf32, #tpu.memory_space<vmem>>, %arg4: memref<1x1xf32, #tpu.memory_space<smem>>, %arg5: memref<8x128xf32, #tpu.memory_space<vmem>>) attributes {dimension_semantics = [#tpu.dimension_semantics<arbitrary>], iteration_bounds = array<i64: 1>, scalar_prefetch = 0 : i64, scratch_operands = 1 : i64, tpu.core_type = #tpu.core_type<tc>, window_params = [{pipeline_mode = #tpu.pipeline_mode<synchronous>, transform_indices = @transform_0, window_bounds = array<i64: 256, 512>}, {transform_indices = @transform_1, window_bounds = array<i64: 8, 256>}, {transform_indices = @transform_2, window_bounds = array<i64: 8, 256>}, {transform_indices = @transform_3, window_bounds = array<i64: 1, 1>}]} {
    %c0_i32 = arith.constant 0 : i32
    %0 = arith.cmpi eq, %arg0, %c0_i32 : i32
    %1 = arith.extui %0 : i1 to i32
    %c0_i32_0 = arith.constant 0 : i32
    %2 = arith.cmpi ne, %1, %c0_i32_0 : i32
    scf.if %2 {
      %cst_14 = arith.constant 0.000000e+00 : f32
      %33 = vector.broadcast %cst_14 : f32 to vector<8x128xf32>
      %c0_15 = arith.constant 0 : index
      %c0_16 = arith.constant 0 : index
      %34 = vector.load %arg5[%c0_15, %c0_16] : memref<8x128xf32, #tpu.memory_space<vmem>>, vector<8x128xf32>
      tpu.vector_store %arg5[%c0_15, %c0_16], %33 {strides = array<i32>} : memref<8x128xf32, #tpu.memory_space<vmem>>, vector<8x128xf32>,
      %cst_17 = arith.constant 0.000000e+00 : f32
      %c0_18 = arith.constant 0 : index
      %c0_19 = arith.constant 0 : index
      %35 = memref.load %arg4[%c0_18, %c0_19] : memref<1x1xf32, #tpu.memory_space<smem>>
      memref.store %cst_17, %arg4[%c0_18, %c0_19] : memref<1x1xf32, #tpu.memory_space<smem>>
    } else {
    }
    %c0 = arith.constant 0 : index
    %c0_1 = arith.constant 0 : index
    %3 = vector.load %arg2[%c0, %c0_1] : memref<8x256xf32, #tpu.memory_space<vmem>>, vector<8x256xf32>
    %c0_2 = arith.constant 0 : index
    %c0_3 = arith.constant 0 : index
    %4 = vector.load %arg3[%c0_2, %c0_3] : memref<8x256xf32, #tpu.memory_space<vmem>>, vector<8x256xf32>
    %5 = tpu.concatenate %3, %4 in 0 : vector<8x256xf32>, vector<8x256xf32> -> vector<16x256xf32>
    %6 = arith.truncf %5 : vector<16x256xf32> to vector<16x256xbf16>
    %c0_4 = arith.constant 0 : index
    %c0_5 = arith.constant 0 : index
    %7 = vector.load %arg1[%c0_4, %c0_5] : memref<256x512xbf16, #tpu.memory_space<vmem>>, vector<256x512xbf16>
    %cst = arith.constant dense<0.000000e+00> : vector<16x512xf32>
    %8 = tpu.matmul %6, %7, %cst {dimension_numbers = #tpu.dot_dimension_numbers<[1], [0], [0], [1], [0, 0, 1, 1], [], []>} : vector<16x256xbf16>, vector<256x512xbf16>, vector<16x512xf32> -> vector<16x512xf32>
    %9 = vector.extract_strided_slice %8 {offsets = [0, 0], sizes = [16, 256], strides = [1, 1]} : vector<16x512xf32> to vector<16x256xf32>
    %10 = vector.extract_strided_slice %8 {offsets = [0, 256], sizes = [16, 256], strides = [1, 1]} : vector<16x512xf32> to vector<16x256xf32>
    %11 = arith.mulf %9, %9 : vector<16x256xf32>
    %12 = arith.mulf %10, %10 : vector<16x256xf32>
    %13 = arith.addf %11, %12 : vector<16x256xf32>
    %14 = vector.extract_strided_slice %13 {offsets = [0, 0], sizes = [8, 256], strides = [1, 1]} : vector<16x256xf32> to vector<8x256xf32>
    %15 = vector.extract_strided_slice %13 {offsets = [8, 0], sizes = [8, 256], strides = [1, 1]} : vector<16x256xf32> to vector<8x256xf32>
    %16 = arith.addf %14, %15 : vector<8x256xf32>
    %17 = arith.mulf %14, %15 : vector<8x256xf32>
    %18 = math.sqrt %17 : vector<8x256xf32>
    %cst_6 = arith.constant 2.000000e+00 : f32
    %19 = vector.broadcast %cst_6 : f32 to vector<8x256xf32>
    %20 = arith.mulf %19, %18 : vector<8x256xf32>
    %21 = arith.subf %16, %20 : vector<8x256xf32>
    %22 = vector.extract_strided_slice %21 {offsets = [0, 0], sizes = [8, 128], strides = [1, 1]} : vector<8x256xf32> to vector<8x128xf32>
    %23 = vector.extract_strided_slice %21 {offsets = [0, 128], sizes = [8, 128], strides = [1, 1]} : vector<8x256xf32> to vector<8x128xf32>
    %24 = arith.addf %22, %23 : vector<8x128xf32>
    %c0_7 = arith.constant 0 : index
    %c0_8 = arith.constant 0 : index
    %25 = vector.load %arg5[%c0_7, %c0_8] : memref<8x128xf32, #tpu.memory_space<vmem>>, vector<8x128xf32>
    %26 = vector.shape_cast %24 : vector<8x128xf32> to vector<1x8x128xf32>
    %cst_9 = arith.constant dense<0.000000e+00> : vector<8x128xf32>
    %27 = vector.multi_reduction <add>, %26, %cst_9 [0] : vector<1x8x128xf32> to vector<8x128xf32>
    %28 = arith.addf %25, %27 : vector<8x128xf32>
    %c0_10 = arith.constant 0 : index
    %c0_11 = arith.constant 0 : index
    %29 = vector.load %arg5[%c0_10, %c0_11] : memref<8x128xf32, #tpu.memory_space<vmem>>, vector<8x128xf32>
    tpu.vector_store %arg5[%c0_10, %c0_11], %28 {strides = array<i32>} : memref<8x128xf32, #tpu.memory_space<vmem>>, vector<8x128xf32>,
    %c0_i32_12 = arith.constant 0 : i32
    %30 = arith.cmpi eq, %arg0, %c0_i32_12 : i32
    %31 = arith.extui %30 : i1 to i32
    %c0_i32_13 = arith.constant 0 : i32
    %32 = arith.cmpi ne, %31, %c0_i32_13 : i32
    scf.if %32 {
      %c0_14 = arith.constant 0 : index
      %c0_15 = arith.constant 0 : index
      %33 = vector.load %arg5[%c0_14, %c0_15] : memref<8x128xf32, #tpu.memory_space<vmem>>, vector<8x128xf32>
      %34 = vector.shape_cast %33 : vector<8x128xf32> to vector<1x8x128xf32>
      %cst_16 = arith.constant dense<0.000000e+00> : vector<1xf32>
      %35 = vector.multi_reduction <add>, %34, %cst_16 [1, 2] : vector<1x8x128xf32> to vector<1xf32>
      %36 = vector.shape_cast %35 : vector<1xf32> to vector<1x1x1xf32>
      %37 = vector.extract %36[0, 0, 0] : f32 from vector<1x1x1xf32>
      %cst_17 = arith.constant 4.8828125E-4 : f32
      %38 = arith.mulf %37, %cst_17 : f32
      %c0_18 = arith.constant 0 : index
      %c0_19 = arith.constant 0 : index
      %39 = memref.load %arg4[%c0_18, %c0_19] : memref<1x1xf32, #tpu.memory_space<smem>>
      memref.store %38, %arg4[%c0_18, %c0_19] : memref<1x1xf32, #tpu.memory_space<smem>>
    } else {
    }
    return
  }
  func.func @transform_0(%arg0: i32) -> (i32, i32) {
    %c0_i32 = arith.constant 0 : i32
    %c0_i32_0 = arith.constant 0 : i32
    %c0_i32_1 = arith.constant 0 : i32
    return %c0_i32, %c0_i32_0 : i32, i32
  }
  func.func @transform_1(%arg0: i32) -> (i32, i32) {
    %c0_i32 = arith.constant 0 : i32
    %c0_i32_0 = arith.constant 0 : i32
    return %arg0, %c0_i32 : i32, i32
  }
  func.func @transform_2(%arg0: i32) -> (i32, i32) {
    %c0_i32 = arith.constant 0 : i32
    %c0_i32_0 = arith.constant 0 : i32
    return %arg0, %c0_i32 : i32, i32
  }
  func.func @transform_3(%arg0: i32) -> (i32, i32) {
    %c0_i32 = arith.constant 0 : i32
    %c0_i32_0 = arith.constant 0 : i32
    %c0_i32_1 = arith.constant 0 : i32
    return %c0_i32, %c0_i32_0 : i32, i32
  }
}

</mosaic_0001>

<bundles_post_ra>
// kernel: tpu_custom_call.1
= control target key start
LH: loop header
LB: loop body
LE: loop exit
PB: predicated region body
PF: predicated region fallthrough
CT: control target
= control target key end

     0   :  { %8 = vsyncpa [#allocation4], 0  ;;  %s941_s0 = inlined_call_operand.hbm [shape: bf16[256,512], index: 0, kind: input, shape index: {}]   ;;  %s942_s1 = inlined_call_operand.hbm [shape: f32[8,256], index: 1, kind: input, shape index: {}]   ;;  %s943_s2 = inlined_call_operand.hbm [shape: f32[8,256], index: 2, kind: input, shape index: {}]   ;;  %s944_s3 = inlined_call_operand.hbm [shape: f32[1,1], index: 3, kind: output, shape index: {}]  }
   0x1   :  { %9 = vsyncpa [#allocation7], 0 }
   0x2   :  { %10 = vsyncpa [#allocation5], 0  ;;  %s860_s12 = smov [#allocation6]   ;;  %s861_s14 = smov [#allocation3]  }
   0x3   :  { %s29_s13 = sshll.u32 %s860_s12, 4  ;;  %s16_s15 = sshll.u32 %s861_s14, 4  ;;  %s30_s13 = int_to_ptr.vmem [resolvable:$true] %s29_s13  ;;  %s886_s15 = int_to_ptr.vmem [resolvable:$true] %s16_s15 }
   0x4   :  { %s778_s18 = scalar_lea.hbm %s942_s1, 256 }
   0x5   :  { %p779_p0 = scmp.ne.s32.totalorder %s942_s1, %s778_s18  ;;  %p782_p1 = scmp.lt.u32.totalorder %s778_s18, %s942_s1 }
   0x7   :  { %p784_p2 = pnand %p782_p1, %p779_p0 }
   0x9   :  { %787 = shalt.err (!%p784_p2)
}
   0xa   :  { %s788_s23 = scalar_lea.vmem %s30_s13, 256  ;;  %p793_p4 = scmp.lt.s32.totalorder %s30_s13, %s30_s13 }
   0xb   :  { %p789_p3 = scmp.ne.s32.totalorder %s30_s13, %s788_s23  ;;  %p794_p5 = scmp.lt.s32.totalorder %s788_s23, %s788_s23 }
   0xd   :  { %p795_p6 = por %p794_p5, %p793_p4 }
   0xf   :  { %p796_p7 = pnand %p795_p6, %p789_p3 }
  0x11   :  { %799 = shalt.err (!%p796_p7)
}
  0x12   :  { %32 = dma.hbm_to_vmem [thread:$0]  %s942_s1, 256, %s30_s13, [#allocation7]  }
  0x13   :  { %s800_s28 = scalar_lea.hbm %s941_s0, 8192 }
  0x14   :  { %p801_p8 = scmp.ne.s32.totalorder %s941_s0, %s800_s28  ;;  %p804_p9 = scmp.lt.u32.totalorder %s800_s28, %s941_s0 }
  0x16   :  { %p806_p10 = pnand %p804_p9, %p801_p8 }
  0x18   :  { %809 = shalt.err (!%p806_p10)
}
  0x19   :  { %s810_s6 = scalar_lea.vmem %s886_s15, 8192  ;;  %p815_p12 = scmp.lt.s32.totalorder %s886_s15, %s886_s15 }
  0x1a   :  { %p811_p11 = scmp.ne.s32.totalorder %s886_s15, %s810_s6  ;;  %p816_p13 = scmp.lt.s32.totalorder %s810_s6, %s810_s6 }
  0x1c   :  { %p817_p0 = por %p816_p13, %p815_p12 }
  0x1e   :  { %p818_p1 = pnand %p817_p0, %p811_p11 }
  0x20   :  { %821 = shalt.err (!%p818_p1)
}
  0x21   :  { %s862_s1 = smov 256   ;;  %s863_s7 = smov 16  }
  0x22   :  { %22 = dma.hbm_to_vmem [thread:$0]  %s941_s0, 8192, %s886_s15, [#allocation4], %s862_s1, %s862_s1, %s863_s7  }
  0x23   :  { %s864_s10 = smov [#allocation8]   ;;  %s822_s14 = scalar_lea.hbm %s943_s2, 256 }
  0x24   :  { %s39_s11 = sshll.u32 %s864_s10, 4  ;;  %p823_p2 = scmp.ne.s32.totalorder %s943_s2, %s822_s14  ;;  %s40_s11 = int_to_ptr.vmem [resolvable:$true] %s39_s11 }
  0x25   :  { %p826_p3 = scmp.lt.u32.totalorder %s822_s14, %s943_s2 }
  0x27   :  { %p828_p4 = pnand %p826_p3, %p823_p2 }
  0x29   :  { %831 = shalt.err (!%p828_p4)
}
  0x2a   :  { %s832_s20 = scalar_lea.vmem %s40_s11, 256  ;;  %p837_p6 = scmp.lt.s32.totalorder %s40_s11, %s40_s11 }
  0x2b   :  { %p833_p5 = scmp.ne.s32.totalorder %s40_s11, %s832_s20  ;;  %p838_p7 = scmp.lt.s32.totalorder %s832_s20, %s832_s20 }
  0x2d   :  { %p839_p8 = por %p838_p7, %p837_p6 }
  0x2f   :  { %p840_p9 = pnand %p839_p8, %p833_p5 }
  0x31   :  { %843 = shalt.err (!%p840_p9)
}
  0x32   :  { %42 = dma.hbm_to_vmem [thread:$0]  %s943_s2, 256, %s40_s11, [#allocation7]  }
  0x33   :  { %854 = dma.done.wait [#allocation4], 8192  }
  0x34   :  { %855 = vsyncadd [#allocation4], 4294959104 }
  0x35   :  { %856 = dma.done.wait [#allocation7], 512  }
  0x36   :  { %857 = vsyncadd [#allocation7], 4294966784  ;;  %v678_v0 = vld [vmem:[#allocation3 + $0x4] ss:$16 sps:$4 sm:$0xff]   ;;  %v680_v1 = vld [vmem:[#allocation3 + $0xc] ss:$16 sps:$4 sm:$0xff]  }
  0x37   :  { %449 = vmatprep.subr.bf16.mxu0 %v678_v0  ;;  %v682_v2 = vld [vmem:[#allocation3] ss:$16 sps:$4 sm:$0xff]   ;;  %v683_v3 = vld [vmem:[#allocation3 + $0x8] ss:$16 sps:$4 sm:$0xff]   ;;  %492 = vmatprep.subr.bf16.mxu1 %v680_v1  ;;  %v684_v4 = vld [vmem:[#allocation3 + $0x24] ss:$16 sps:$4 sm:$0xff]  }
  0x38   :  { %450 = vmatpush1.bf16.msra.mxu0 %v682_v2  ;;  %493 = vmatpush1.bf16.msra.mxu1 %v683_v3  ;;  %v686_v5 = vld [vmem:[#allocation3 + $0x2c] ss:$16 sps:$4 sm:$0xff]   ;;  %v688_v6 = vld [vmem:[#allocation3 + $0x20] ss:$16 sps:$4 sm:$0xff]   ;;  %v689_v7 = vld [vmem:[#allocation3 + $0x28] ss:$16 sps:$4 sm:$0xff]  }
  0x39   :  { %451 = vmatprep.subr.bf16.mxu0 %v684_v4  ;;  %494 = vmatprep.subr.bf16.mxu1 %v686_v5  ;;  %v690_v8 = vld [vmem:[#allocation3 + $0x44] ss:$16 sps:$4 sm:$0xff]   ;;  %v692_v9 = vld [vmem:[#allocation3 + $0x4c] ss:$16 sps:$4 sm:$0xff]   ;;  %v694_v10 = vld [vmem:[#allocation3 + $0x40] ss:$16 sps:$4 sm:$0xff]  }
  0x3a   :  { %v695_v11 = vld [vmem:[#allocation3 + $0x48] ss:$16 sps:$4 sm:$0xff]   ;;  %v696_v12 = vld [vmem:[#allocation3 + $0x64] ss:$16 sps:$4 sm:$0xff]   ;;  %v698_v13 = vld [vmem:[#allocation3 + $0x6c] ss:$16 sps:$4 sm:$0xff]  }
  0x3b   :  { %v700_v14 = vld [vmem:[#allocation3 + $0x60] ss:$16 sps:$4 sm:$0xff]   ;;  %v701_v15 = vld [vmem:[#allocation3 + $0x68] ss:$16 sps:$4 sm:$0xff]   ;;  %v702_v16 = vld [vmem:[#allocation3 + $0x84] ss:$16 sps:$4 sm:$0xff]  }
  0x3c   :  { %452 = vmatpush1.bf16.msra.mxu0 %v688_v6  ;;  %495 = vmatpush1.bf16.msra.mxu1 %v689_v7  ;;  %v704_v17 = vld [vmem:[#allocation3 + $0x8c] ss:$16 sps:$4 sm:$0xff]   ;;  %v706_v18 = vld [vmem:[#allocation3 + $0x80] ss:$16 sps:$4 sm:$0xff]   ;;  %v707_v19 = vld [vmem:[#allocation3 + $0x88] ss:$16 sps:$4 sm:$0xff]  }
  0x3d   :  { %453 = vmatprep.subr.bf16.mxu0 %v690_v8  ;;  %496 = vmatprep.subr.bf16.mxu1 %v692_v9  ;;  %v708_v20 = vld [vmem:[#allocation3 + $0xa4] ss:$16 sps:$4 sm:$0xff]   ;;  %v710_v21 = vld [vmem:[#allocation3 + $0xac] ss:$16 sps:$4 sm:$0xff]   ;;  %v712_v22 = vld [vmem:[#allocation3 + $0xa0] ss:$16 sps:$4 sm:$0xff]  }
  0x3e   :  { %v713_v23 = vld [vmem:[#allocation3 + $0xa8] ss:$16 sps:$4 sm:$0xff]   ;;  %v714_v24 = vld [vmem:[#allocation3 + $0xc4] ss:$16 sps:$4 sm:$0xff]   ;;  %v716_v25 = vld [vmem:[#allocation3 + $0xcc] ss:$16 sps:$4 sm:$0xff]  }
  0x3f   :  { %v718_v26 = vld [vmem:[#allocation3 + $0xc0] ss:$16 sps:$4 sm:$0xff]   ;;  %v719_v27 = vld [vmem:[#allocation3 + $0xc8] ss:$16 sps:$4 sm:$0xff]   ;;  %v720_v28 = vld [vmem:[#allocation3 + $0xe4] ss:$16 sps:$4 sm:$0xff]  }
  0x40   :  { %454 = vmatpush1.bf16.msra.mxu0 %v694_v10  ;;  %497 = vmatpush1.bf16.msra.mxu1 %v695_v11  ;;  %v722_v29 = vld [vmem:[#allocation3 + $0xec] ss:$16 sps:$4 sm:$0xff]   ;;  %v724_v30 = vld [vmem:[#allocation3 + $0xe0] ss:$16 sps:$4 sm:$0xff]   ;;  %v725_v31 = vld [vmem:[#allocation3 + $0xe8] ss:$16 sps:$4 sm:$0xff]  }
  0x41   :  { %455 = vmatprep.subr.bf16.mxu0 %v696_v12  ;;  %498 = vmatprep.subr.bf16.mxu1 %v698_v13  ;;  %v726_v32 = vld [vmem:[#allocation3 + $0x104] ss:$16 sps:$4 sm:$0xff]   ;;  %v728_v33 = vld [vmem:[#allocation3 + $0x10c] ss:$16 sps:$4 sm:$0xff]   ;;  %v730_v34 = vld [vmem:[#allocation3 + $0x100] ss:$16 sps:$4 sm:$0xff]  }
  0x42   :  { %v731_v35 = vld [vmem:[#allocation3 + $0x108] ss:$16 sps:$4 sm:$0xff]   ;;  %v732_v36 = vld [vmem:[#allocation3 + $0x124] ss:$16 sps:$4 sm:$0xff]   ;;  %v734_v37 = vld [vmem:[#allocation3 + $0x12c] ss:$16 sps:$4 sm:$0xff]  }
  0x43   :  { %v736_v38 = vld [vmem:[#allocation3 + $0x120] ss:$16 sps:$4 sm:$0xff]   ;;  %v737_v39 = vld [vmem:[#allocation3 + $0x128] ss:$16 sps:$4 sm:$0xff]   ;;  %v738_v40 = vld [vmem:[#allocation3 + $0x144] ss:$16 sps:$4 sm:$0xff]  }
  0x44   :  { %456 = vmatpush1.bf16.msra.mxu0 %v700_v14  ;;  %499 = vmatpush1.bf16.msra.mxu1 %v701_v15  ;;  %v740_v41 = vld [vmem:[#allocation3 + $0x14c] ss:$16 sps:$4 sm:$0xff]   ;;  %v742_v42 = vld [vmem:[#allocation3 + $0x140] ss:$16 sps:$4 sm:$0xff]   ;;  %v743_v43 = vld [vmem:[#allocation3 + $0x148] ss:$16 sps:$4 sm:$0xff]  }
  0x45   :  { %457 = vmatprep.subr.bf16.mxu0 %v702_v16  ;;  %500 = vmatprep.subr.bf16.mxu1 %v704_v17  ;;  %v744_v44 = vld [vmem:[#allocation3 + $0x164] ss:$16 sps:$4 sm:$0xff]   ;;  %v746_v45 = vld [vmem:[#allocation3 + $0x16c] ss:$16 sps:$4 sm:$0xff]   ;;  %v748_v48 = vld [vmem:[#allocation3 + $0x160] ss:$16 sps:$4 sm:$0xff]  }
  0x46   :  { %v60_v46 = vld [vmem:[#allocation6 + $0x8] sm:$0xff]  ;;  %v62_v47 = vld [vmem:[#allocation8 + $0x8] sm:$0xff]  ;;  %v750_v51 = vld [vmem:[#allocation3 + $0x184] ss:$16 sps:$4 sm:$0xff]   ;;  %s844_s24 = scalar_lea.hbm %s944_s3, 16 }
  0x47   :  { %v749_v49 = vld [vmem:[#allocation3 + $0x168] ss:$16 sps:$4 sm:$0xff]   ;;  %v64_v50 = vpack.c.bf16 %v62_v47, %v60_v46  ;;  %v752_v52 = vld [vmem:[#allocation3 + $0x18c] ss:$16 sps:$4 sm:$0xff]   ;;  %v754_v53 = vld [vmem:[#allocation3 + $0x180] ss:$16 sps:$4 sm:$0xff]   ;;  %p845_p10 = scmp.ne.s32.totalorder %s944_s3, %s844_s24  ;;  %p848_p11 = scmp.lt.u32.totalorder %s844_s24, %s944_s3 }
  0x48   :  { %458 = vmatpush1.bf16.msra.mxu0 %v706_v18  ;;  %501 = vmatpush1.bf16.msra.mxu1 %v707_v19  ;;  %v755_v54 = vld [vmem:[#allocation3 + $0x188] ss:$16 sps:$4 sm:$0xff]   ;;  %v756_v55 = vld [vmem:[#allocation3 + $0x1a4] ss:$16 sps:$4 sm:$0xff]   ;;  %v758_v56 = vld [vmem:[#allocation3 + $0x1ac] ss:$16 sps:$4 sm:$0xff]  }
  0x49   :  { %459 = vmatprep.subr.bf16.mxu0 %v708_v20  ;;  %502 = vmatprep.subr.bf16.mxu1 %v710_v21  ;;  %v760_v57 = vld [vmem:[#allocation3 + $0x1a0] ss:$16 sps:$4 sm:$0xff]   ;;  %v761_v58 = vld [vmem:[#allocation3 + $0x1a8] ss:$16 sps:$4 sm:$0xff]   ;;  %v762_v59 = vld [vmem:[#allocation3 + $0x1c4] ss:$16 sps:$4 sm:$0xff]   ;;  %p850_p12 = pnand %p848_p11, %p845_p10 }
  0x4a   :  { %481 = vmatprep.mubr.bf16.mxu0 %v64_v50  ;;  %524 = vmatprep.mubr.bf16.mxu1 %v64_v50  ;;  %v764_v60 = vld [vmem:[#allocation3 + $0x1cc] ss:$16 sps:$4 sm:$0xff]   ;;  %v766_v61 = vld [vmem:[#allocation3 + $0x1c0] ss:$16 sps:$4 sm:$0xff]   ;;  %v767_v62 = vld [vmem:[#allocation3 + $0x1c8] ss:$16 sps:$4 sm:$0xff]  }
  0x4b   :  { %v768_v63 = vld [vmem:[#allocation3 + $0x1e4] ss:$16 sps:$4 sm:$0xff]   ;;  %v770_v0 = vld [vmem:[#allocation3 + $0x1ec] ss:$16 sps:$4 sm:$0xff]   ;;  %v772_v1 = vld [vmem:[#allocation3 + $0x1e0] ss:$16 sps:$4 sm:$0xff]  }
  0x4c   :  { %460 = vmatpush1.bf16.msra.mxu0 %v712_v22  ;;  %503 = vmatpush1.bf16.msra.mxu1 %v713_v23  ;;  %v773_v2 = vld [vmem:[#allocation3 + $0x1e8] ss:$16 sps:$4 sm:$0xff]   ;;  %v59_v3 = vld [vmem:[#allocation6] sm:$0xff]  ;;  %v61_v4 = vld [vmem:[#allocation8] sm:$0xff] }
  0x4d   :  { %461 = vmatprep.subr.bf16.mxu0 %v714_v24  ;;  %504 = vmatprep.subr.bf16.mxu1 %v716_v25  ;;  %v63_v5 = vpack.c.bf16 %v61_v4, %v59_v3 }
  0x50   :  { %462 = vmatpush1.bf16.msra.mxu0 %v718_v26  ;;  %505 = vmatpush1.bf16.msra.mxu1 %v719_v27 }
  0x51   :  { %463 = vmatprep.subr.bf16.mxu0 %v720_v28  ;;  %506 = vmatprep.subr.bf16.mxu1 %v722_v29 }
  0x54   :  { %464 = vmatpush1.bf16.msra.mxu0 %v724_v30  ;;  %507 = vmatpush1.bf16.msra.mxu1 %v725_v31 }
  0x55   :  { %465 = vmatprep.subr.bf16.mxu0 %v726_v32  ;;  %508 = vmatprep.subr.bf16.mxu1 %v728_v33 }
  0x58   :  { %466 = vmatpush1.bf16.msra.mxu0 %v730_v34  ;;  %509 = vmatpush1.bf16.msra.mxu1 %v731_v35 }
  0x59   :  { %467 = vmatprep.subr.bf16.mxu0 %v732_v36  ;;  %510 = vmatprep.subr.bf16.mxu1 %v734_v37 }
  0x5c   :  { %468 = vmatpush1.bf16.msra.mxu0 %v736_v38  ;;  %511 = vmatpush1.bf16.msra.mxu1 %v737_v39 }
  0x5d   :  { %469 = vmatprep.subr.bf16.mxu0 %v738_v40  ;;  %512 = vmatprep.subr.bf16.mxu1 %v740_v41 }
  0x60   :  { %470 = vmatpush1.bf16.msra.mxu0 %v742_v42  ;;  %513 = vmatpush1.bf16.msra.mxu1 %v743_v43 }
  0x61   :  { %471 = vmatprep.subr.bf16.mxu0 %v744_v44  ;;  %514 = vmatprep.subr.bf16.mxu1 %v746_v45 }
  0x64   :  { %472 = vmatpush1.bf16.msra.mxu0 %v748_v48  ;;  %515 = vmatpush1.bf16.msra.mxu1 %v749_v49 }
  0x65   :  { %473 = vmatprep.subr.bf16.mxu0 %v750_v51  ;;  %516 = vmatprep.subr.bf16.mxu1 %v752_v52 }
  0x68   :  { %474 = vmatpush1.bf16.msra.mxu0 %v754_v53  ;;  %517 = vmatpush1.bf16.msra.mxu1 %v755_v54 }
  0x69   :  { %475 = vmatprep.subr.bf16.mxu0 %v756_v55  ;;  %518 = vmatprep.subr.bf16.mxu1 %v758_v56 }
  0x6c   :  { %476 = vmatpush1.bf16.msra.mxu0 %v760_v57  ;;  %519 = vmatpush1.bf16.msra.mxu1 %v761_v58 }
  0x6d   :  { %477 = vmatprep.subr.bf16.mxu0 %v762_v59  ;;  %520 = vmatprep.subr.bf16.mxu1 %v764_v60 }
  0x70   :  { %478 = vmatpush1.bf16.msra.mxu0 %v766_v61  ;;  %521 = vmatpush1.bf16.msra.mxu1 %v767_v62 }
  0x71   :  { %479 = vmatprep.subr.bf16.mxu0 %v768_v63  ;;  %522 = vmatprep.subr.bf16.mxu1 %v770_v0 }
  0x74   :  { %480 = vmatpush1.bf16.msra.mxu0 %v772_v1  ;;  %523 = vmatpush1.bf16.msra.mxu1 %v773_v2 }
  0x77   :  { %482 = vmatmul.mubr.bf16.vlgmr.msra.gmra.mrb[0].mxu0 %v63_v5  ;;  %525 = vmatmul.mubr.bf16.vlgmr.msra.gmra.mrb[0].mxu1 %v63_v5 }
 0x14a   :  { %v483_v6 = vpop.f32.mrb[0].mxu0  ;;  %v526_v7 = vpop.f32.mrb[0].mxu1 }
 0x14b   :  { %v535_v8 = vmul.f32 %v483_v6, %v483_v6  ;;  %v539_v9 = vmul.f32 %v526_v7, %v526_v7  ;;  %v485_v10 = vpop.f32.mrb[1].mxu0  ;;  %v528_v11 = vpop.f32.mrb[1].mxu1 }
 0x14c   :  { %v536_v12 = vmul.f32 %v485_v10, %v485_v10  ;;  %v540_v13 = vmul.f32 %v528_v11, %v528_v11  ;;  %v487_v14 = vpop.f32.mrb[2].mxu0  ;;  %v530_v15 = vpop.f32.mrb[2].mxu1 }
 0x14d   :  { %v543_v16 = vadd.f32 %v539_v9, %v535_v8  ;;  %v537_v17 = vmul.f32 %v487_v14, %v487_v14  ;;  %v541_v18 = vmul.f32 %v530_v15, %v530_v15  ;;  %v489_v19 = vpop.f32.mrb[3].mxu0  ;;  %v532_v20 = vpop.f32.mrb[3].mxu1 }
 0x14e   :  { %v544_v21 = vadd.f32 %v540_v13, %v536_v12  ;;  %v538_v22 = vmul.f32 %v489_v19, %v489_v19  ;;  %v542_v23 = vmul.f32 %v532_v20, %v532_v20 }
 0x14f   :  { %v545_v24 = vadd.f32 %v541_v18, %v537_v17 }
 0x150   :  { %v546_v25 = vadd.f32 %v542_v23, %v538_v22 }
 0x151   :  { %v549_v26 = vmul.f32 %v545_v24, %v543_v16  ;;  %v547_v27 = vadd.f32 %v545_v24, %v543_v16 }
 0x152   :  { %v548_v28 = vadd.f32 %v546_v25, %v544_v21  ;;  %v550_v29 = vmul.f32 %v546_v25, %v544_v21 }
 0x153   :  { %774 = vrsqrt.f32 %v549_v26  ;;  %vm553_vm0 = vcmp.eq.f32.partialorder %v549_v26, inf  ;;  %v556_v33 = vand.u32 2147483648, %v549_v26  ;;  %vm555_vm1 = vcmp.eq.f32.partialorder %v549_v26, 0.0 }
 0x154   :  { %776 = vrsqrt.f32 %v550_v29  ;;  %vm560_vm2 = vcmp.eq.f32.partialorder %v550_v29, inf  ;;  %v563_v36 = vand.u32 2147483648, %v550_v29  ;;  %vm562_vm3 = vcmp.eq.f32.partialorder %v550_v29, 0.0 }
 0x15d   :  { %v775_v30 = vpop.eup %774 }
 0x15e   :  { %v777_v31 = vpop.eup %776  ;;  %v552_v32 = vmul.f32 %v775_v30, %v549_v26 }
 0x15f   :  { %v559_v34 = vmul.f32 %v777_v31, %v550_v29 }
 0x160   :  { %v554_v35 = vsel %vm553_vm0, %v549_v26, %v552_v32 }
 0x161   :  { %v557_v37 = vsel %vm555_vm1, %v556_v33, %v554_v35  ;;  %v561_v38 = vsel %vm560_vm2, %v550_v29, %v559_v34 }
 0x162   :  { %v564_v39 = vsel %vm562_vm3, %v563_v36, %v561_v38  ;;  %v565_v40 = vmul.f32 2.0, %v557_v37 }
 0x163   :  { %v566_v41 = vmul.f32 2.0, %v564_v39 }
 0x164   :  { %v567_v42 = vsub.f32 %v547_v27, %v565_v40 }
 0x165   :  { %v568_v43 = vsub.f32 %v548_v28, %v566_v41 }
 0x167   :  { %v569_v44 = vadd.f32 %v568_v43, %v567_v42 }
 0x169   :  { %578 = vadd.xlane.f32.xlu0 %v569_v44 }
 0x1f6   :  { %v579_v45 = vpop.xlane.xlu0 %578 }
 0x1f7   :  { %v580_v46 = vrot.slane %v579_v45, 4 }
 0x1f9   :  { %v581_v47 = vadd.f32 %v580_v46, %v579_v45 }
 0x1fb   :  { %v582_v48 = vrot.slane %v581_v47, 2 }
 0x1fd   :  { %v583_v49 = vadd.f32 %v582_v48, %v581_v47 }
 0x1ff   :  { %v584_v50 = vrot.slane %v583_v49, 1 }
 0x201   :  { %v585_v51 = vadd.f32 %v584_v50, %v583_v49 }
 0x203   :  { %669 = vpush %v585_v51 }
 0x234   :  { %s670_s2 = spop %669 }
 0x235   :  { %s587_s21 = smul.f32 0.00048828125, %s670_s2 }
 0x237   :  { %589 = sst [smem:[#allocation9]] %s587_s21 }
 0x238   :  { %853 = shalt.err (!%p850_p12)
}
 0x239   :  { %s865_s29 = smov [#allocation9]  }
 0x23a   :  { %597 = dma.smem_to_hbm %s865_s29, 16, %s944_s3, [#allocation5]  }
 0x23b   :  { %858 = dma.done.wait [#allocation5], 16  }
 0x23c   :  { %859 = vsyncadd [#allocation5], 4294967280 }
 0x23d   :  { %601 = sfence }
 0x23e   :  { %602 = vsyncpa [#allocation4], 1 }
 0x23f   :  { %603 = vsyncpa [#allocation7], 1 }
 0x240   :  { %604 = vsyncpa [#allocation5], 1 }

</bundles_post_ra>
